<compile_context>
chip_gen: v5e
topology: v5e:2x2
jax: 0.10.0
libtpu: 0.0.40
codegen_flags: <defaults>
</compile_context>

<pallas_src>
import functools

import jax
import jax.numpy as jnp
from jax.experimental import pallas as pl
from jax.experimental.pallas import tpu as pltpu

LANE = 128      # lane width (last dim)
SUBLANE = 8     # sublane width (second-to-last dim)


def _round_up(x, m):
    return (x + m - 1) // m * m


def _pad2d(x, rows, cols):
    return jnp.pad(x, ((0, rows - x.shape[0]), (0, cols - x.shape[1])))


# ------------------------------ fused kernel --------------------------------

def _dagnn_fused_kernel(x_ref, w1_ref, b1_ref, w2_ref, b2_ref, s_ref, adj_ref,
                        o_ref, *, k):
    """Fused DAGNN forward.

    z   = relu(x @ W1 + b1) @ W2 + b2                      (dropout=0, no BN)
    H_i = (D^-1/2 A D^-1/2)^i z
    out = sum_i sigmoid(H_i @ s) * H_i
    """
    # --- 2-layer MLP ---------------------------------------------------------
    h = jnp.dot(x_ref[...], w1_ref[...], preferred_element_type=jnp.float32)
    h = jnp.maximum(h + b1_ref[...], 0.0)                       # F.relu
    z = jnp.dot(h, w2_ref[...], preferred_element_type=jnp.float32) + b2_ref[...]

    # --- symmetric normalization from the resident adj block -----------------
    adj = adj_ref[...].astype(jnp.float32)                      # bf16 0/1 -> f32 (exact)
    degs = jnp.sum(adj, axis=-1, keepdims=True)                 # in-degrees, (N, 1)
    norm = jax.lax.rsqrt(jnp.maximum(degs, 1.0))                # clamp(min=1) ** -0.5

    # --- k-hop propagation with sigmoid hop attention -------------------------
    s_row = s_ref[...]                                          # (1, D): s on lanes
    feats = z
    score = jax.nn.sigmoid(jnp.sum(feats * s_row, axis=-1, keepdims=True))
    acc = score * feats
    for _ in range(k):                                          # k small & static -> unrolled
        feats = norm * jnp.dot(adj, feats * norm,
                               preferred_element_type=jnp.float32)
        score = jax.nn.sigmoid(jnp.sum(feats * s_row, axis=-1, keepdims=True))
        acc = acc + score * feats
    o_ref[...] = acc.astype(o_ref.dtype)


# ------------------------------ wrapper --------------------------------------

def dagnn_forward(adj, feats, params, k):
    n, in_dim = feats.shape
    hid_dim = params["w1"].shape[1]
    out_dim = params["w2"].shape[1]

    # Lane/sublane-dense padding (exact: all pads are zero).
    n_p = _round_up(n, SUBLANE)
    f_p = _round_up(in_dim, LANE)
    h_p = _round_up(hid_dim, LANE)
    d_p = _round_up(out_dim, LANE)

    x_p = _pad2d(feats.astype(jnp.float32), n_p, f_p)
    w1_p = _pad2d(params["w1"], f_p, h_p)
    b1_p = _pad2d(params["b1"], 1, h_p)
    w2_p = _pad2d(params["w2"], h_p, d_p)
    b2_p = _pad2d(params["b2"], 1, d_p)
    s_p = _pad2d(params["s"].reshape(1, out_dim), 1, d_p)
    adj_p = _pad2d(adj, n_p, n_p).astype(jnp.bfloat16)          # 0/1 -> lossless bf16

    vmem = pl.BlockSpec(memory_space=pltpu.MemorySpace.VMEM)    # whole-array VMEM blocks
    out = pl.pallas_call(
        functools.partial(_dagnn_fused_kernel, k=k),
        out_shape=jax.ShapeDtypeStruct((n_p, d_p), jnp.float32),
        in_specs=[vmem] * 7,
        out_specs=vmem,
    )(x_p, w1_p, b1_p, w2_p, b2_p, s_p, adj_p)
    return out[:n, :out_dim]


# ------------------------- deterministic param init --------------------------

def _xavier_uniform(key, shape_torch, gain, transpose=False):
    """torch.nn.init.xavier_uniform_ on a tensor of torch shape (fan_out, fan_in)."""
    fan_out, fan_in = shape_torch
    a = gain * (6.0 / (fan_in + fan_out)) ** 0.5
    w = jax.random.uniform(key, shape_torch, jnp.float32, minval=-a, maxval=a)
    return w.T if transpose else w


def init_params(key, in_dim, hid_dim, out_dim):
    k1, k2, k3 = jax.random.split(key, 3)
    relu_gain = 2.0 ** 0.5                    # calculate_gain('relu')
    sigmoid_gain = 1.0                        # calculate_gain('sigmoid')
    # Linear weights stored transposed ((in, out)) so the kernel does x @ W.
    w1 = _xavier_uniform(k1, (hid_dim, in_dim), relu_gain, transpose=True)
    w2 = _xavier_uniform(k2, (out_dim, hid_dim), 1.0, transpose=True)
    b1 = jnp.zeros((1, hid_dim), jnp.float32)
    b2 = jnp.zeros((1, out_dim), jnp.float32)
    # DAGNNConv.s has torch shape (out_dim, 1): fan_in=1, fan_out=out_dim.
    s = _xavier_uniform(k3, (out_dim, 1), sigmoid_gain)
    return {"w1": w1, "b1": b1, "w2": w2, "b2": b2, "s": s}


# ----------------------------- pure-JAX reference -----------------------------

def reference_forward(adj, feats, params, k):
    h = jnp.maximum(feats @ params["w1"] + params["b1"], 0.0)
    z = h @ params["w2"] + params["b2"]
    degs = jnp.maximum(jnp.sum(adj, axis=1), 1.0)
    norm = (degs ** -0.5).reshape(-1, 1)
    results = [z]
    f = z
    for _ in range(k):
        f = norm * (adj @ (f * norm))
        results.append(f)
    H = jnp.stack(results, axis=1)                      # (N, k+1, d)
    S = jax.nn.sigmoid(H @ params["s"])                 # (N, k+1, 1)
    S = jnp.transpose(S, (0, 2, 1))                     # (N, 1, k+1)
    return jnp.squeeze(S @ H)                           # (N, d)


# ----------------------------------- main -------------------------------------

if __name__ == "__main__":
    N, IN_DIM, HID_DIM, OUT_DIM, K = 16, 16, 32, 8, 3

    key = jax.random.PRNGKey(0)
    k_feat, k_adj, k_param = jax.random.split(key, 3)

    feats = jax.random.normal(k_feat, (N, IN_DIM), jnp.float32)

    # Deterministic symmetric adjacency, no self loops.
    a = (jax.random.uniform(k_adj, (N, N)) < 0.3).astype(jnp.float32)
    adj = jnp.maximum(a, a.T) * (1.0 - jnp.eye(N, dtype=jnp.float32))

    params = init_params(k_param, IN_DIM, HID_DIM, OUT_DIM)

    out = dagnn_forward(adj, feats, params, K)
    out = jax.block_until_ready(out)

    ref = reference_forward(adj, feats, params, K)
    assert out.shape == (N, OUT_DIM), out.shape
    max_err = float(jnp.max(jnp.abs(out - ref)))
    assert jnp.allclose(out, ref, atol=5e-5, rtol=5e-5), max_err

    print("KERNEL_OK")
</pallas_src>

<mosaic_0001>
module attributes {stable_mosaic.version = 11 : i64} {
  func.func @_dagnn_fused_kernel(%arg0: memref<16x128xf32, #tpu.memory_space<vmem>>, %arg1: memref<128x128xf32, #tpu.memory_space<vmem>>, %arg2: memref<1x128xf32, #tpu.memory_space<vmem>>, %arg3: memref<128x128xf32, #tpu.memory_space<vmem>>, %arg4: memref<1x128xf32, #tpu.memory_space<vmem>>, %arg5: memref<1x128xf32, #tpu.memory_space<vmem>>, %arg6: memref<16x16xbf16, #tpu.memory_space<vmem>>, %arg7: memref<16x128xf32, #tpu.memory_space<vmem>>) attributes {dimension_semantics = [], scalar_prefetch = 0 : i64, scratch_operands = 0 : i64, tpu.core_type = #tpu.core_type<tc>} {
    %c0 = arith.constant 0 : index
    %c0_0 = arith.constant 0 : index
    %0 = vector.load %arg0[%c0, %c0_0] : memref<16x128xf32, #tpu.memory_space<vmem>>, vector<16x128xf32>
    %c0_1 = arith.constant 0 : index
    %c0_2 = arith.constant 0 : index
    %1 = vector.load %arg1[%c0_1, %c0_2] : memref<128x128xf32, #tpu.memory_space<vmem>>, vector<128x128xf32>
    %cst = arith.constant dense<0.000000e+00> : vector<16x128xf32>
    %2 = tpu.matmul %0, %1, %cst {dimension_numbers = #tpu.dot_dimension_numbers<[1], [0], [0], [1], [0, 0, 1, 1], [], []>} : vector<16x128xf32>, vector<128x128xf32>, vector<16x128xf32> -> vector<16x128xf32>
    %c0_3 = arith.constant 0 : index
    %c0_4 = arith.constant 0 : index
    %3 = vector.load %arg2[%c0_3, %c0_4] : memref<1x128xf32, #tpu.memory_space<vmem>>, vector<1x128xf32>
    %4 = vector.broadcast %3 : vector<1x128xf32> to vector<16x128xf32>
    %5 = arith.addf %2, %4 : vector<16x128xf32>
    %cst_5 = arith.constant 0.000000e+00 : f32
    %6 = vector.broadcast %cst_5 : f32 to vector<16x128xf32>
    %7 = arith.maximumf %5, %6 : vector<16x128xf32>
    %c0_6 = arith.constant 0 : index
    %c0_7 = arith.constant 0 : index
    %8 = vector.load %arg3[%c0_6, %c0_7] : memref<128x128xf32, #tpu.memory_space<vmem>>, vector<128x128xf32>
    %cst_8 = arith.constant dense<0.000000e+00> : vector<16x128xf32>
    %9 = tpu.matmul %7, %8, %cst_8 {dimension_numbers = #tpu.dot_dimension_numbers<[1], [0], [0], [1], [0, 0, 1, 1], [], []>} : vector<16x128xf32>, vector<128x128xf32>, vector<16x128xf32> -> vector<16x128xf32>
    %c0_9 = arith.constant 0 : index
    %c0_10 = arith.constant 0 : index
    %10 = vector.load %arg4[%c0_9, %c0_10] : memref<1x128xf32, #tpu.memory_space<vmem>>, vector<1x128xf32>
    %11 = vector.broadcast %10 : vector<1x128xf32> to vector<16x128xf32>
    %12 = arith.addf %9, %11 : vector<16x128xf32>
    %c0_11 = arith.constant 0 : index
    %c0_12 = arith.constant 0 : index
    %13 = vector.load %arg6[%c0_11, %c0_12] : memref<16x16xbf16, #tpu.memory_space<vmem>>, vector<16x16xbf16>
    %14 = arith.extf %13 : vector<16x16xbf16> to vector<16x16xf32>
    %cst_13 = arith.constant dense<0.000000e+00> : vector<16xf32>
    %15 = vector.multi_reduction <add>, %14, %cst_13 [1] : vector<16x16xf32> to vector<16xf32>
    %16 = vector.shape_cast %15 : vector<16xf32> to vector<16x1xf32>
    %cst_14 = arith.constant 1.000000e+00 : f32
    %17 = vector.broadcast %cst_14 : f32 to vector<16x1xf32>
    %18 = arith.maximumf %16, %17 : vector<16x1xf32>
    %19 = math.rsqrt %18 : vector<16x1xf32>
    %c0_15 = arith.constant 0 : index
    %c0_16 = arith.constant 0 : index
    %20 = vector.load %arg5[%c0_15, %c0_16] : memref<1x128xf32, #tpu.memory_space<vmem>>, vector<1x128xf32>
    %21 = vector.broadcast %20 : vector<1x128xf32> to vector<16x128xf32>
    %22 = arith.mulf %12, %21 : vector<16x128xf32>
    %cst_17 = arith.constant dense<0.000000e+00> : vector<16xf32>
    %23 = vector.multi_reduction <add>, %22, %cst_17 [1] : vector<16x128xf32> to vector<16xf32>
    %24 = vector.shape_cast %23 : vector<16xf32> to vector<16x1xf32>
    %25 = arith.negf %24 : vector<16x1xf32>
    %26 = math.exp %25 : vector<16x1xf32>
    %cst_18 = arith.constant 1.000000e+00 : f32
    %27 = vector.broadcast %cst_18 : f32 to vector<16x1xf32>
    %28 = arith.addf %27, %26 : vector<16x1xf32>
    %29 = arith.divf %27, %28 : vector<16x1xf32>
    %30 = vector.broadcast %29 : vector<16x1xf32> to vector<16x128xf32>
    %31 = arith.mulf %30, %12 : vector<16x128xf32>
    %32 = vector.broadcast %19 : vector<16x1xf32> to vector<16x128xf32>
    %33 = arith.mulf %12, %32 : vector<16x128xf32>
    %cst_19 = arith.constant dense<0.000000e+00> : vector<16x128xf32>
    %34 = tpu.matmul %14, %33, %cst_19 {dimension_numbers = #tpu.dot_dimension_numbers<[1], [0], [0], [1], [0, 0, 1, 1], [], []>} : vector<16x16xf32>, vector<16x128xf32>, vector<16x128xf32> -> vector<16x128xf32>
    %35 = vector.broadcast %19 : vector<16x1xf32> to vector<16x128xf32>
    %36 = arith.mulf %35, %34 : vector<16x128xf32>
    %37 = vector.broadcast %20 : vector<1x128xf32> to vector<16x128xf32>
    %38 = arith.mulf %36, %37 : vector<16x128xf32>
    %cst_20 = arith.constant dense<0.000000e+00> : vector<16xf32>
    %39 = vector.multi_reduction <add>, %38, %cst_20 [1] : vector<16x128xf32> to vector<16xf32>
    %40 = vector.shape_cast %39 : vector<16xf32> to vector<16x1xf32>
    %41 = arith.negf %40 : vector<16x1xf32>
    %42 = math.exp %41 : vector<16x1xf32>
    %cst_21 = arith.constant 1.000000e+00 : f32
    %43 = vector.broadcast %cst_21 : f32 to vector<16x1xf32>
    %44 = arith.addf %43, %42 : vector<16x1xf32>
    %45 = arith.divf %43, %44 : vector<16x1xf32>
    %46 = vector.broadcast %45 : vector<16x1xf32> to vector<16x128xf32>
    %47 = arith.mulf %46, %36 : vector<16x128xf32>
    %48 = arith.addf %31, %47 : vector<16x128xf32>
    %49 = vector.broadcast %19 : vector<16x1xf32> to vector<16x128xf32>
    %50 = arith.mulf %36, %49 : vector<16x128xf32>
    %cst_22 = arith.constant dense<0.000000e+00> : vector<16x128xf32>
    %51 = tpu.matmul %14, %50, %cst_22 {dimension_numbers = #tpu.dot_dimension_numbers<[1], [0], [0], [1], [0, 0, 1, 1], [], []>} : vector<16x16xf32>, vector<16x128xf32>, vector<16x128xf32> -> vector<16x128xf32>
    %52 = vector.broadcast %19 : vector<16x1xf32> to vector<16x128xf32>
    %53 = arith.mulf %52, %51 : vector<16x128xf32>
    %54 = vector.broadcast %20 : vector<1x128xf32> to vector<16x128xf32>
    %55 = arith.mulf %53, %54 : vector<16x128xf32>
    %cst_23 = arith.constant dense<0.000000e+00> : vector<16xf32>
    %56 = vector.multi_reduction <add>, %55, %cst_23 [1] : vector<16x128xf32> to vector<16xf32>
    %57 = vector.shape_cast %56 : vector<16xf32> to vector<16x1xf32>
    %58 = arith.negf %57 : vector<16x1xf32>
    %59 = math.exp %58 : vector<16x1xf32>
    %cst_24 = arith.constant 1.000000e+00 : f32
    %60 = vector.broadcast %cst_24 : f32 to vector<16x1xf32>
    %61 = arith.addf %60, %59 : vector<16x1xf32>
    %62 = arith.divf %60, %61 : vector<16x1xf32>
    %63 = vector.broadcast %62 : vector<16x1xf32> to vector<16x128xf32>
    %64 = arith.mulf %63, %53 : vector<16x128xf32>
    %65 = arith.addf %48, %64 : vector<16x128xf32>
    %66 = vector.broadcast %19 : vector<16x1xf32> to vector<16x128xf32>
    %67 = arith.mulf %53, %66 : vector<16x128xf32>
    %cst_25 = arith.constant dense<0.000000e+00> : vector<16x128xf32>
    %68 = tpu.matmul %14, %67, %cst_25 {dimension_numbers = #tpu.dot_dimension_numbers<[1], [0], [0], [1], [0, 0, 1, 1], [], []>} : vector<16x16xf32>, vector<16x128xf32>, vector<16x128xf32> -> vector<16x128xf32>
    %69 = vector.broadcast %19 : vector<16x1xf32> to vector<16x128xf32>
    %70 = arith.mulf %69, %68 : vector<16x128xf32>
    %71 = vector.broadcast %20 : vector<1x128xf32> to vector<16x128xf32>
    %72 = arith.mulf %70, %71 : vector<16x128xf32>
    %cst_26 = arith.constant dense<0.000000e+00> : vector<16xf32>
    %73 = vector.multi_reduction <add>, %72, %cst_26 [1] : vector<16x128xf32> to vector<16xf32>
    %74 = vector.shape_cast %73 : vector<16xf32> to vector<16x1xf32>
    %75 = arith.negf %74 : vector<16x1xf32>
    %76 = math.exp %75 : vector<16x1xf32>
    %cst_27 = arith.constant 1.000000e+00 : f32
    %77 = vector.broadcast %cst_27 : f32 to vector<16x1xf32>
    %78 = arith.addf %77, %76 : vector<16x1xf32>
    %79 = arith.divf %77, %78 : vector<16x1xf32>
    %80 = vector.broadcast %79 : vector<16x1xf32> to vector<16x128xf32>
    %81 = arith.mulf %80, %70 : vector<16x128xf32>
    %82 = arith.addf %65, %81 : vector<16x128xf32>
    %c0_28 = arith.constant 0 : index
    %c0_29 = arith.constant 0 : index
    %83 = vector.load %arg7[%c0_28, %c0_29] : memref<16x128xf32, #tpu.memory_space<vmem>>, vector<16x128xf32>
    tpu.vector_store %arg7[%c0_28, %c0_29], %82 {strides = array<i32>} : memref<16x128xf32, #tpu.memory_space<vmem>>, vector<16x128xf32>,
    return
  }
}

</mosaic_0001>

<bundles_post_ra>
// kernel: tpu_custom_call.1
= control target key start
LH: loop header
LB: loop body
LE: loop exit
PB: predicated region body
PF: predicated region fallthrough
CT: control target
= control target key end

     0   :  { %12 = vsyncpa [#allocation3], 0  ;;  %s987_s0 = inlined_call_operand.hbm [shape: f32[16,128], index: 0, kind: input, shape index: {}]   ;;  %s988_s1 = inlined_call_operand.hbm [shape: f32[128,128], index: 1, kind: input, shape index: {}]   ;;  %s989_s2 = inlined_call_operand.vmem [shape: f32[1,128], index: 2, kind: input, shape index: {}]   ;;  %s990_s3 = inlined_call_operand.hbm [shape: f32[128,128], index: 3, kind: input, shape index: {}]   ;;  %s991_s4 = inlined_call_operand.vmem [shape: f32[1,128], index: 4, kind: input, shape index: {}]   ;;  %s992_s5 = inlined_call_operand.vmem [shape: f32[1,128], index: 5, kind: input, shape index: {}]   ;;  %s993_s6 = inlined_call_operand.hbm [shape: bf16[16,16], index: 6, kind: input, shape index: {}]   ;;  %s994_s7 = inlined_call_operand.hbm [shape: f32[16,128], index: 7, kind: output, shape index: {}]  }
   0x1   :  { %13 = vsyncpa [#allocation6], 0 }
   0x2   :  { %14 = vsyncpa [#allocation9], 0 }
   0x3   :  { %15 = vsyncpa [#allocation4], 0  ;;  %s33_s26 = sshll.u32 %s988_s1, 4  ;;  %s711_s27 = smov [#allocation5]   ;;  %s34_s26 = int_to_ptr.hbm [resolvable:$true] %s33_s26 }
   0x4   :  { %s35_s28 = sshll.u32 %s711_s27, 4  ;;  %s20_s8 = sshll.u32 %s987_s0, 4  ;;  %s36_s28 = int_to_ptr.vmem [resolvable:$true] %s35_s28  ;;  %s21_s8 = int_to_ptr.hbm [resolvable:$true] %s20_s8 }
   0x5   :  { %s712_s9 = smov 128   ;;  %s713_s10 = smov 8  }
   0x6   :  { %41 = dma.hbm_to_vmem [thread:$0]  %s34_s26, 2048, %s36_s28, [#allocation6], %s712_s9, %s712_s9, %s713_s10  }
   0x7   :  { %s714_s11 = smov [#allocation2]   ;;  %s48_s1 = sshll.u32 %s990_s3, 4  ;;  %s49_s1 = int_to_ptr.hbm [resolvable:$true] %s48_s1 }
   0x8   :  { %s22_s12 = sshll.u32 %s714_s11, 4  ;;  %s65_s16 = sshll.u32 %s993_s6, 4  ;;  %s23_s12 = int_to_ptr.vmem [resolvable:$true] %s22_s12  ;;  %s66_s16 = int_to_ptr.hbm [resolvable:$true] %s65_s16 }
   0x9   :  { %28 = dma.hbm_to_vmem [thread:$0]  %s21_s8, 256, %s23_s12, [#allocation3], %s712_s9, %s712_s9, %s713_s10  }
   0xa   :  { %s715_s17 = smov [#allocation7]   ;;  %s716_s19 = smov [#allocation8]  }
   0xb   :  { %s50_s18 = sshll.u32 %s715_s17, 4  ;;  %s67_s3 = sshll.u32 %s716_s19, 4  ;;  %s51_s18 = int_to_ptr.vmem [resolvable:$true] %s50_s18  ;;  %s68_s3 = int_to_ptr.vmem [resolvable:$true] %s67_s3 }
   0xc   :  { %56 = dma.hbm_to_vmem [thread:$0]  %s49_s1, 2048, %s51_s18, [#allocation6], %s712_s9, %s712_s9, %s713_s10  }
   0xd   :  { %s717_s20 = smov 64   ;;  %s718_s21 = smov 4  }
   0xe   :  { %73 = dma.hbm_to_vmem [thread:$0]  %s66_s16, 128, %s68_s3, [#allocation9], %s717_s20, %s717_s20, %s718_s21  }
   0xf   :  { %703 = dma.done.wait [#allocation3], 256  }
  0x10   :  { %704 = vsyncadd [#allocation3], 4294967040 }
  0x11   :  { %705 = dma.done.wait [#allocation6], 4096  }
  0x12   :  { %706 = vsyncadd [#allocation6], 4294963200 }
  0x13   :  { %707 = dma.done.wait [#allocation9], 128  }
  0x14   :  { %708 = vsyncadd [#allocation9], 4294967168  ;;  %v107_v0 = vld [vmem:[#allocation5 + $0x78] sm:$0xff]  ;;  %v106_v1 = vld [vmem:[#allocation5 + $0x70] sm:$0xff]  ;;  %vm184_vm0 = vcmask 130048   ;;  %s502_s28 = sshll.u32 %s994_s7, 4  ;;  %s503_s28 = int_to_ptr.hbm [resolvable:$true] %s502_s28 }
  0x15   :  { %112 = vmatpush.msra.mxu0 %v107_v0  ;;  %v105_v2 = vld [vmem:[#allocation5 + $0x68] sm:$0xff]  ;;  %v104_v3 = vld [vmem:[#allocation5 + $0x60] sm:$0xff]  ;;  %v103_v4 = vld [vmem:[#allocation5 + $0x58] sm:$0xff] }
  0x16   :  { %v102_v5 = vld [vmem:[#allocation5 + $0x50] sm:$0xff]  ;;  %v152_v6 = vld [vmem:[#allocation7 + $0x78] sm:$0xff]  ;;  %v532_v8 = vld [vmem:[#allocation8] sm:$0xff]  }
  0x17   :  { %113 = vmatpush.msra.mxu0 %v106_v1  ;;  %v151_v7 = vld [vmem:[#allocation7 + $0x70] sm:$0xff]  ;;  %157 = vmatpush.msra.mxu1 %v152_v6  ;;  %v101_v9 = vld [vmem:[#allocation5 + $0x48] sm:$0xff]  ;;  %v781_v11 = vunpack.c.h.bf16 %v532_v8  ;;  %v100_v12 = vld [vmem:[#allocation5 + $0x40] sm:$0xff]  ;;  %v785_v17 = vunpack.c.l.bf16 %v532_v8 }
  0x18   :  { %v150_v10 = vld [vmem:[#allocation7 + $0x68] sm:$0xff]  ;;  %v149_v13 = vld [vmem:[#allocation7 + $0x60] sm:$0xff]  ;;  %v99_v15 = vld [vmem:[#allocation5 + $0x38] sm:$0xff] }
  0x19   :  { %114 = vmatpush.msra.mxu0 %v105_v2  ;;  %158 = vmatpush.msra.mxu1 %v151_v7  ;;  %v188_v14 = vsel %vm184_vm0, %v781_v11, 0.0  ;;  %v148_v16 = vld [vmem:[#allocation7 + $0x58] sm:$0xff]  ;;  %v98_v18 = vld [vmem:[#allocation5 + $0x30] sm:$0xff]  ;;  %v97_v20 = vld [vmem:[#allocation5 + $0x28] sm:$0xff]  ;;  %v185_v22 = vsel %vm184_vm0, %v785_v17, 0.0 }
  0x1a   :  { %189 = vadd.xlane.f32.xlu0 %v188_v14  ;;  %v147_v19 = vld [vmem:[#allocation7 + $0x50] sm:$0xff]  ;;  %v146_v21 = vld [vmem:[#allocation7 + $0x48] sm:$0xff]  ;;  %v96_v23 = vld [vmem:[#allocation5 + $0x20] sm:$0xff] }
  0x1b   :  { %115 = vmatpush.msra.mxu0 %v104_v3  ;;  %159 = vmatpush.msra.mxu1 %v150_v10  ;;  %v145_v24 = vld [vmem:[#allocation7 + $0x40] sm:$0xff]  ;;  %v95_v25 = vld [vmem:[#allocation5 + $0x18] sm:$0xff]  ;;  %v94_v27 = vld [vmem:[#allocation5 + $0x10] sm:$0xff] }
  0x1c   :  { %v144_v26 = vld [vmem:[#allocation7 + $0x38] sm:$0xff]  ;;  %v143_v28 = vld [vmem:[#allocation7 + $0x30] sm:$0xff]  ;;  %v93_v29 = vld [vmem:[#allocation5 + $0x8] sm:$0xff] }
  0x1d   :  { %116 = vmatpush.msra.mxu0 %v103_v4  ;;  %160 = vmatpush.msra.mxu1 %v149_v13  ;;  %v142_v30 = vld [vmem:[#allocation7 + $0x28] sm:$0xff]  ;;  %v92_v31 = vld [vmem:[#allocation5] sm:$0xff]  ;;  %v90_v33 = vld [vmem:[#allocation2] sm:$0xff] }
  0x1e   :  { %v141_v32 = vld [vmem:[#allocation7 + $0x20] sm:$0xff]  ;;  %v140_v34 = vld [vmem:[#allocation7 + $0x18] sm:$0xff]  ;;  %v139_v36 = vld [vmem:[#allocation7 + $0x10] sm:$0xff] }
  0x1f   :  { %117 = vmatpush.msra.mxu0 %v102_v5  ;;  %161 = vmatpush.msra.mxu1 %v148_v16  ;;  %v91_v35 = vld [vmem:[#allocation2 + $0x8] sm:$0xff]  ;;  %v138_v37 = vld [vmem:[#allocation7 + $0x8] sm:$0xff]  ;;  %v137_v38 = vld [vmem:[#allocation7] sm:$0xff] }
  0x20   :  { %v544_v39 = vld [vmem:[%s989_s2] ss:$0 sm:$0xff] }
  0x21   :  { %118 = vmatpush.msra.mxu0 %v101_v9  ;;  %162 = vmatpush.msra.mxu1 %v147_v19  ;;  %v545_v56 = vld [vmem:[%s991_s4] ss:$0 sm:$0xff]  ;;  %s719_s4 = smov [#allocation10]  }
  0x22   :  { %186 = vadd.xlane.f32.xlu0 %v185_v22  ;;  %v546_v58 = vld [vmem:[%s992_s5] ss:$0 sm:$0xff]  ;;  %s500_s5 = sshll.u32 %s719_s4, 4  ;;  %s501_s5 = int_to_ptr.vmem [resolvable:$true] %s500_s5 }
  0x23   :  { %119 = vmatpush.msra.mxu0 %v100_v12  ;;  %163 = vmatpush.msra.mxu1 %v146_v21 }
  0x25   :  { %120 = vmatpush.msra.mxu0 %v99_v15  ;;  %164 = vmatpush.msra.mxu1 %v145_v24 }
  0x27   :  { %121 = vmatpush.msra.mxu0 %v98_v18  ;;  %165 = vmatpush.msra.mxu1 %v144_v26 }
  0x29   :  { %122 = vmatpush.msra.mxu0 %v97_v20  ;;  %166 = vmatpush.msra.mxu1 %v143_v28 }
  0x2b   :  { %123 = vmatpush.msra.mxu0 %v96_v23  ;;  %167 = vmatpush.msra.mxu1 %v142_v30 }
  0x2d   :  { %124 = vmatpush.msra.mxu0 %v95_v25  ;;  %168 = vmatpush.msra.mxu1 %v141_v32 }
  0x2f   :  { %125 = vmatpush.msra.mxu0 %v94_v27  ;;  %169 = vmatpush.msra.mxu1 %v140_v34 }
  0x31   :  { %126 = vmatpush.msra.mxu0 %v93_v29  ;;  %170 = vmatpush.msra.mxu1 %v139_v36 }
  0x33   :  { %127 = vmatpush.msra.mxu0 %v92_v31  ;;  %171 = vmatpush.msra.mxu1 %v138_v37 }
  0x34   :  { %128 = vmatmul.f32.vlgmr.msra.gmra.mxu0 %v90_v33 }
  0x35   :  { %172 = vmatpush.msra.mxu1 %v137_v38 }
  0x3c   :  { %131 = vmatmul.f32.gmra.mxu0 %v91_v35 }
  0x8d   :  { %v190_v46 = vpop.xlane.xlu0 %189 }
  0x8e   :  { %v192_v48 = vmax.f32 %v190_v46, 1.0 }
  0x90   :  { %547 = vrsqrt.f32 %v192_v48  ;;  %vm209_vm1 = vweird.f32 %v192_v48 }
  0x95   :  { %v187_v47 = vpop.xlane.xlu0 %186 }
  0x96   :  { %v191_v49 = vmax.f32 %v187_v47, 1.0  ;;  %v548_v50 = vpop.eup %547 }
  0x97   :  { %v204_v52 = vmul.f32 %v548_v50, %v192_v48  ;;  %vm210_vm2 = vweird.f32 %v548_v50 }
  0x98   :  { %549 = vrsqrt.f32 %v191_v49  ;;  %vm199_vm3 = vweird.f32 %v191_v49  ;;  %vm211_vm5 = vmor %vm209_vm1, %vm210_vm2 }
  0x99   :  { %v205_v54 = vmul.f32 %v548_v50, %v204_v52 }
  0x9b   :  { %v206_v57 = vmul.f32 0.5, %v205_v54 }
  0x9d   :  { %v207_v62 = vsub.f32 1.5, %v206_v57 }
  0x9e   :  { %v550_v51 = vpop.eup %549 }
  0x9f   :  { %v194_v53 = vmul.f32 %v550_v51, %v191_v49  ;;  %v208_v1 = vmul.f32 %v548_v50, %v207_v62  ;;  %vm200_vm4 = vweird.f32 %v550_v51 }
  0xa0   :  { %vm201_vm6 = vmor %vm199_vm3, %vm200_vm4 }
  0xa1   :  { %v195_v55 = vmul.f32 %v550_v51, %v194_v53  ;;  %v212_v5 = vsel %vm211_vm5, %v548_v50, %v208_v1 }
  0xa3   :  { %v196_v59 = vmul.f32 0.5, %v195_v55 }
  0xa5   :  { %v197_v0 = vsub.f32 1.5, %v196_v59 }
  0xa7   :  { %v198_v2 = vmul.f32 %v550_v51, %v197_v0 }
  0xa9   :  { %v202_v8 = vsel %vm201_vm6, %v550_v51, %v198_v2 }
  0xb1   :  { %v129_v40 = vpop.f32.mrf.mxu0 }
  0xb2   :  { %v130_v41 = vadd.f32 %v544_v39, %v129_v40 }
  0xb4   :  { %v135_v42 = vmax.f32 %v130_v41, 0.0 }
  0xb6   :  { %173 = vmatmul.f32.vlgmr.msra.gmra.mxu1 %v135_v42 }
  0xb9   :  { %v132_v43 = vpop.f32.mrf.mxu0 }
  0xba   :  { %v133_v44 = vadd.f32 %v544_v39, %v132_v43 }
  0xbc   :  { %v136_v45 = vmax.f32 %v133_v44, 0.0 }
  0xbe   :  { %176 = vmatmul.f32.gmra.mxu1 %v136_v45 }
 0x133   :  { %v174_v60 = vpop.f32.mrf.mxu1 }
 0x134   :  { %v798_v61 = vadd.f32 %v545_v56, %v174_v60 }
 0x136   :  { %v217_v63 = vmul.f32 %v546_v58, %v798_v61  ;;  %v263_v9 = vmul.f32 %v202_v8, %v798_v61 }
 0x138   :  { %219 = vadd.xlane.f32.xlu1 %v217_v63 }
 0x13b   :  { %v177_v3 = vpop.f32.mrf.mxu1 }
 0x13c   :  { %v801_v4 = vadd.f32 %v545_v56, %v177_v3 }
 0x13e   :  { %v264_v6 = vmul.f32 %v212_v5, %v801_v4  ;;  %v218_v7 = vmul.f32 %v546_v58, %v801_v4 }
 0x140   :  { %285 = vmatpush.msra.mxu2 %v264_v6  ;;  %221 = vadd.xlane.f32.xlu1 %v218_v7 }
 0x142   :  { %286 = vmatpush.msra.mxu2 %v263_v9 }
 0x143   :  { %519 = vmatmul.msk.f32.vlgmr.msra.gmra.mxu2 %vm184_vm0, %v785_v17 }
 0x14b   :  { %520 = vmatmul.msk.f32.gmra.mxu2 %vm184_vm0, %v781_v11 }
 0x1ab   :  { %v220_v34 = vpop.xlane.xlu1 %219 }
 0x1ac   :  { %v517_v36 = vmul.f32 -1.442695, %v220_v34 }
 0x1ae   :  { %551 = vpow2.f32 %v517_v36 }
 0x1b3   :  { %v222_v37 = vpop.xlane.xlu1 %221 }
 0x1b4   :  { %v552_v40 = vpop.eup %551  ;;  %v518_v45 = vmul.f32 -1.442695, %v222_v37 }
 0x1b5   :  { %v229_v42 = vadd.f32 1.0, %v552_v40 }
 0x1b7   :  { %v242_v6 = vand.u32 2147483648, %v229_v42  ;;  %vm236_vm8 = vweird.f32 %v229_v42 }
 0x1c6   :  { %v288_v10 = vpop.f32.mrf.mxu2 }
 0x1c7   :  { %v810_v12 = vmul.f32 %v288_v10, %v202_v8 }
 0x1c9   :  { %v296_v13 = vmul.f32 %v546_v58, %v810_v12  ;;  %v344_v19 = vmul.f32 %v810_v12, %v202_v8 }
 0x1cb   :  { %298 = vadd.xlane.f32.xlu2 %v296_v13 }
 0x1ce   :  { %v291_v14 = vpop.f32.mrf.mxu2 }
 0x1cf   :  { %v813_v15 = vmul.f32 %v291_v14, %v212_v5 }
 0x1d1   :  { %v345_v16 = vmul.f32 %v813_v15, %v212_v5  ;;  %v297_v18 = vmul.f32 %v546_v58, %v813_v15 }
 0x1d3   :  { %360 = vmatpush.msra.mxu3 %v345_v16  ;;  %300 = vadd.xlane.f32.xlu2 %v297_v18  ;;  %v240_v16 = vand.u32 2147483647, %v229_v42 }
 0x1d5   :  { %361 = vmatpush.msra.mxu3 %v344_v19  ;;  %vm241_vm11 = vcmp.eq.f32.partialorder %v240_v16, 8.507059e+37 }
 0x1d6   :  { %523 = vmatmul.msk.f32.vlgmr.msra.gmra.mxu3 %vm184_vm0, %v785_v17 }
 0x1de   :  { %524 = vmatmul.msk.f32.gmra.mxu3 %vm184_vm0, %v781_v11 }
 0x23e   :  { %v299_v35 = vpop.xlane.xlu2 %298 }
 0x259   :  { %v363_v20 = vpop.f32.mrf.mxu3 }
 0x25a   :  { %v822_v21 = vmul.f32 %v363_v20, %v202_v8 }
 0x25c   :  { %v371_v22 = vmul.f32 %v546_v58, %v822_v21  ;;  %v419_v27 = vmul.f32 %v822_v21, %v202_v8 }
 0x25e   :  { %373 = vadd.xlane.f32.xlu0 %v371_v22  ;;  %v243_v22 = vor.u32 1.1754944e-38, %v242_v6 }
 0x261   :  { %v366_v23 = vpop.f32.mrf.mxu3 }
 0x262   :  { %v825_v24 = vmul.f32 %v366_v23, %v212_v5 }
 0x264   :  { %v420_v25 = vmul.f32 %v825_v24, %v212_v5  ;;  %v372_v26 = vmul.f32 %v546_v58, %v825_v24 }
 0x266   :  { %435 = vmatpush.msrb.mxu2 %v420_v25  ;;  %375 = vadd.xlane.f32.xlu1 %v372_v26 }
 0x268   :  { %436 = vmatpush.msrb.mxu2 %v419_v27 }
 0x269   :  { %527 = vmatmul.msk.f32.vlgmr.msrb.gmra.mxu2 %vm184_vm0, %v785_v17  ;;  %v521_v17 = vmul.f32 -1.442695, %v299_v35 }
 0x26b   :  { %553 = vpow2.f32 %v521_v17 }
 0x271   :  { %528 = vmatmul.msk.f32.gmra.mxu2 %vm184_vm0, %v781_v11  ;;  %v301_v11 = vpop.xlane.xlu2 %300  ;;  %v554_v44 = vpop.eup %553 }
 0x272   :  { %v522_v41 = vmul.f32 -1.442695, %v301_v11  ;;  %v840_v47 = vadd.f32 1.0, %v554_v44 }
 0x274   :  { %v321_v34 = vand.u32 2147483648, %v840_v47  ;;  %vm315_vm12 = vweird.f32 %v840_v47  ;;  %v319_v36 = vand.u32 2147483647, %v840_v47 }
 0x276   :  { %vm320_vm1 = vcmp.eq.f32.partialorder %v319_v36, 8.507059e+37 }
 0x2d1   :  { %v374_v38 = vpop.xlane.xlu0 %373 }
 0x2d2   :  { %v525_v39 = vmul.f32 -1.442695, %v374_v38 }
 0x2d4   :  { %555 = vpow2.f32 %v525_v39 }
 0x2d5   :  { %557 = vpow2.f32 %v522_v41 }
 0x2d6   :  { %559 = vrcp.f32 %v229_v42 }
 0x2d7   :  { %561 = vpow2.f32 %v518_v45 }
 0x2d9   :  { %v376_v43 = vpop.xlane.xlu1 %375 }
 0x2da   :  { %v526_v46 = vmul.f32 -1.442695, %v376_v43  ;;  %v556_v48 = vpop.eup %555  ;;  %v322_v43 = vor.u32 1.1754944e-38, %v321_v34 }
 0x2db   :  { %v558_v49 = vpop.eup %557  ;;  %v843_v50 = vadd.f32 1.0, %v556_v48 }
 0x2dc   :  { %563 = vpow2.f32 %v526_v46  ;;  %v560_v51 = vpop.eup %559  ;;  %v845_v53 = vadd.f32 1.0, %v558_v49 }
 0x2dd   :  { %565 = vrcp.f32 %v840_v47  ;;  %v562_v52 = vpop.eup %561  ;;  %v232_v54 = vmul.f32 %v560_v51, %v229_v42  ;;  %vm237_vm7 = vweird.f32 %v560_v51  ;;  %v396_v44 = vand.u32 2147483648, %v843_v50 }
 0x2de   :  { %567 = vrcp.f32 %v843_v50  ;;  %v850_v57 = vadd.f32 1.0, %v562_v52  ;;  %vm872_vm9 = vmor %vm236_vm8, %vm237_vm7  ;;  %vm390_vm2 = vweird.f32 %v843_v50  ;;  %v394_v48 = vand.u32 2147483647, %v843_v50 }
 0x2df   :  { %569 = vrcp.f32 %v845_v53  ;;  %vm330_vm5 = vweird.f32 %v845_v53 }
 0x2e0   :  { %571 = vrcp.f32 %v850_v57  ;;  %v255_v37 = vand.u32 2147483647, %v850_v57  ;;  %v257_v38 = vand.u32 2147483648, %v850_v57  ;;  %vm251_vm14 = vweird.f32 %v850_v57 }
 0x2e1   :  { %vm395_vm7 = vcmp.eq.f32.partialorder %v394_v48, 8.507059e+37 }
 0x2e2   :  { %v564_v55 = vpop.eup %563 }
 0x2e3   :  { %v848_v56 = vpop.eup %565  ;;  %v853_v59 = vadd.f32 1.0, %v564_v55 }
 0x2e4   :  { %v311_v60 = vmul.f32 %v848_v56, %v840_v47  ;;  %v857_v62 = vpop.eup %567  ;;  %vm316_vm10 = vweird.f32 %v848_v56 }
 0x2e5   :  { %573 = vrcp.f32 %v853_v59  ;;  %v861_v2 = vpop.eup %569  ;;  %vm895_vm13 = vmor %vm315_vm12, %vm316_vm10  ;;  %vm391_vm15 = vweird.f32 %v857_v62  ;;  %vm405_vm12 = vweird.f32 %v853_v59 }
 0x2e6   :  { %v312_v3 = vsub.f32 1.0, %v311_v60  ;;  %v865_v7 = vpop.eup %571  ;;  %v326_v9 = vmul.f32 %v861_v2, %v845_v53  ;;  %vm331_vm3 = vweird.f32 %v861_v2  ;;  %vm916_vm4 = vmor %vm390_vm2, %vm391_vm15  ;;  %v336_v60 = vand.u32 2147483648, %v845_v53 }
 0x2e7   :  { %v247_v23 = vmul.f32 %v865_v7, %v850_v57  ;;  %vm252_vm0 = vweird.f32 %v865_v7  ;;  %vm932_vm6 = vmor %vm330_vm5, %vm331_vm3 }
 0x2e8   :  { %v313_v10 = vmul.f32 %v848_v56, %v312_v3  ;;  %v327_v26 = vsub.f32 1.0, %v326_v9  ;;  %vm948_vm10 = vmor %vm251_vm14, %vm252_vm0 }
 0x2e9   :  { %v248_v35 = vsub.f32 1.0, %v247_v23 }
 0x2ea   :  { %v328_v39 = vmul.f32 %v861_v2, %v327_v26 }
 0x2eb   :  { %v870_v14 = vpop.eup %573  ;;  %v249_v47 = vmul.f32 %v865_v7, %v248_v35 }
 0x2ec   :  { %v438_v28 = vpop.f32.mrf.mxu2  ;;  %vm406_vm8 = vweird.f32 %v870_v14 }
 0x2ed   :  { %v834_v29 = vmul.f32 %v438_v28, %v202_v8 }
 0x2ef   :  { %v446_v30 = vmul.f32 %v546_v58, %v834_v29 }
 0x2f1   :  { %448 = vadd.xlane.f32.xlu2 %v446_v30  ;;  %v314_v30 = vadd.f32 %v848_v56, %v313_v10 }
 0x2f3   :  { %v318_v41 = vsel %vm895_vm13, %v848_v56, %v314_v30  ;;  %vm954_vm13 = vmor %vm405_vm12, %vm406_vm8 }
 0x2f4   :  { %v441_v31 = vpop.f32.mrf.mxu2 }
 0x2f5   :  { %v837_v32 = vmul.f32 %v441_v31, %v212_v5  ;;  %v386_v5 = vmul.f32 %v857_v62, %v843_v50 }
 0x2f7   :  { %v447_v33 = vmul.f32 %v546_v58, %v837_v32  ;;  %v233_v58 = vsub.f32 1.0, %v232_v54  ;;  %v387_v13 = vsub.f32 1.0, %v386_v5  ;;  %v323_v54 = vsel %vm320_vm1, %v322_v43, %v318_v41 }
 0x2f8   :  { %v340_v5 = vmul.f32 %v323_v54, %v810_v12  ;;  %vm256_vm1 = vcmp.eq.f32.partialorder %v255_v37, 8.507059e+37 }
 0x2f9   :  { %450 = vadd.xlane.f32.xlu0 %v447_v33  ;;  %v234_v1 = vmul.f32 %v560_v51, %v233_v58  ;;  %v388_v31 = vmul.f32 %v857_v62, %v387_v13  ;;  %v401_v33 = vmul.f32 %v870_v14, %v853_v59  ;;  %v334_v58 = vand.u32 2147483647, %v845_v53 }
 0x2fa   :  { %v337_v13 = vor.u32 1.1754944e-38, %v336_v60 }
 0x2fb   :  { %v235_v8 = vadd.f32 %v560_v51, %v234_v1  ;;  %v402_v40 = vsub.f32 1.0, %v401_v33  ;;  %v389_v42 = vadd.f32 %v857_v62, %v388_v31 }
 0x2fd   :  { %v239_v28 = vsel %vm872_vm9, %v560_v51, %v235_v8  ;;  %v329_v51 = vadd.f32 %v861_v2, %v328_v39  ;;  %v403_v55 = vmul.f32 %v870_v14, %v402_v40  ;;  %v393_v56 = vsel %vm916_vm4, %v857_v62, %v389_v42 }
 0x2fe   :  { %v244_v17 = vsel %vm241_vm11, %v243_v22, %v239_v28  ;;  %vm335_vm11 = vcmp.eq.f32.partialorder %v334_v58, 8.507059e+37 }
 0x2ff   :  { %v261_v45 = vmul.f32 %v244_v17, %v798_v61  ;;  %v333_v53 = vsel %vm932_vm6, %v861_v2, %v329_v51  ;;  %v404_v8 = vadd.f32 %v870_v14, %v403_v55  ;;  %v411_v2 = vand.u32 2147483648, %v853_v59 }
 0x300   :  { %v338_v26 = vsel %vm335_vm11, %v337_v13, %v333_v53 }
 0x301   :  { %v342_v28 = vadd.f32 %v340_v5, %v261_v45  ;;  %v412_v31 = vor.u32 1.1754944e-38, %v411_v2 }
 0x364   :  { %v449_v63 = vpop.xlane.xlu2 %448 }
 0x365   :  { %v529_v0 = vmul.f32 -1.442695, %v449_v63  ;;  %v397_v63 = vor.u32 1.1754944e-38, %v396_v44 }
 0x367   :  { %575 = vpow2.f32 %v529_v0  ;;  %v250_v0 = vadd.f32 %v865_v7, %v249_v47  ;;  %v398_v6 = vsel %vm395_vm7, %v397_v63, %v393_v56 }
 0x36c   :  { %v451_v18 = vpop.xlane.xlu0 %450 }
 0x36d   :  { %v576_v19 = vpop.eup %575  ;;  %v530_v25 = vmul.f32 -1.442695, %v451_v18  ;;  %v409_v18 = vand.u32 2147483647, %v853_v59  ;;  %v408_v59 = vsel %vm954_vm13, %v870_v14, %v404_v8  ;;  %v341_v14 = vmul.f32 %v338_v26, %v813_v15 }
 0x36e   :  { %v879_v27 = vadd.f32 1.0, %v576_v19  ;;  %v415_v19 = vmul.f32 %v398_v6, %v822_v21  ;;  %v258_v21 = vor.u32 1.1754944e-38, %v257_v38 }
 0x36f   :  { %577 = vpow2.f32 %v530_v25  ;;  %v254_v25 = vsel %vm948_vm10, %v865_v7, %v250_v0  ;;  %vm410_vm2 = vcmp.eq.f32.partialorder %v409_v18, 8.507059e+37 }
 0x370   :  { %579 = vrcp.f32 %v879_v27  ;;  %v471_v62 = vand.u32 2147483648, %v879_v27  ;;  %v469_v10 = vand.u32 2147483647, %v879_v27  ;;  %vm465_vm15 = vweird.f32 %v879_v27 }
 0x371   :  { %v417_v34 = vadd.f32 %v415_v19, %v342_v28  ;;  %v259_v17 = vsel %vm256_vm1, %v258_v21, %v254_v25  ;;  %v413_v11 = vsel %vm410_vm2, %v412_v31, %v408_v59 }
 0x372   :  { %v472_v23 = vor.u32 1.1754944e-38, %v471_v62  ;;  %vm470_vm0 = vcmp.eq.f32.partialorder %v469_v10, 8.507059e+37  ;;  %v262_v57 = vmul.f32 %v259_v17, %v801_v4  ;;  %v416_v38 = vmul.f32 %v413_v11, %v825_v24 }
 0x374   :  { %v343_v42 = vadd.f32 %v341_v14, %v262_v57 }
 0x375   :  { %v578_v46 = vpop.eup %577 }
 0x376   :  { %v580_v49 = vpop.eup %579  ;;  %v920_v61 = vadd.f32 1.0, %v578_v46  ;;  %v418_v44 = vadd.f32 %v416_v38, %v343_v42 }
 0x377   :  { %v461_v50 = vmul.f32 %v580_v49, %v879_v27  ;;  %vm466_vm9 = vweird.f32 %v580_v49 }
 0x378   :  { %581 = vrcp.f32 %v920_v61  ;;  %vm467_vm14 = vmor %vm465_vm15, %vm466_vm9  ;;  %v486_v36 = vand.u32 2147483648, %v920_v61  ;;  %v484_v37 = vand.u32 2147483647, %v920_v61  ;;  %vm480_vm4 = vweird.f32 %v920_v61 }
 0x379   :  { %v462_v3 = vsub.f32 1.0, %v461_v50 }
 0x37a   :  { %vm485_vm6 = vcmp.eq.f32.partialorder %v484_v37, 8.507059e+37 }
 0x37b   :  { %v463_v9 = vmul.f32 %v580_v49, %v462_v3 }
 0x37d   :  { %v464_v20 = vadd.f32 %v580_v49, %v463_v9 }
 0x37e   :  { %v582_v22 = vpop.eup %581 }
 0x37f   :  { %v476_v30 = vmul.f32 %v582_v22, %v920_v61  ;;  %v468_v27 = vsel %vm467_vm14, %v580_v49, %v464_v20  ;;  %vm481_vm3 = vweird.f32 %v582_v22 }
 0x380   :  { %v473_v7 = vsel %vm470_vm0, %v472_v23, %v468_v27  ;;  %vm482_vm5 = vmor %vm480_vm4, %vm481_vm3 }
 0x381   :  { %v477_v33 = vsub.f32 1.0, %v476_v30  ;;  %v490_v35 = vmul.f32 %v473_v7, %v834_v29  ;;  %v487_v29 = vor.u32 1.1754944e-38, %v486_v36 }
 0x383   :  { %v478_v39 = vmul.f32 %v582_v22, %v477_v33  ;;  %v492_v40 = vadd.f32 %v490_v35, %v417_v34 }
 0x385   :  { %v479_v41 = vadd.f32 %v582_v22, %v478_v39  ;;  %494 = vst [vmem:[#allocation10] sm:$0xff] %v492_v40 }
 0x387   :  { %v483_v43 = vsel %vm482_vm5, %v582_v22, %v479_v41 }
 0x388   :  { %v488_v15 = vsel %vm485_vm6, %v487_v29, %v483_v43 }
 0x389   :  { %v491_v45 = vmul.f32 %v488_v15, %v837_v32 }
 0x38b   :  { %v493_v4 = vadd.f32 %v491_v45, %v418_v44 }
 0x38d   :  { %495 = vst [vmem:[#allocation10 + $0x8] sm:$0xff] %v493_v4 }
 0x38e   :  { %508 = dma.vmem_to_hbm [thread:$0]  %s501_s5, 256, %s503_s28, [#allocation4], %s712_s9, %s712_s9, %s713_s10  }
 0x38f   :  { %709 = dma.done.wait [#allocation4], 256  }
 0x390   :  { %710 = vsyncadd [#allocation4], 4294967040 }
 0x391   :  { %513 = vsyncpa [#allocation3], 1 }
 0x392   :  { %514 = vsyncpa [#allocation6], 1 }
 0x393   :  { %515 = vsyncpa [#allocation9], 1 }
 0x394   :  { %516 = vsyncpa [#allocation4], 1 }

</bundles_post_ra>
